<compile_context>
chip_gen: v7x
topology: tpu7x:2x2x1
jax: 0.10.0
libtpu: 0.0.40
codegen_flags: <defaults>
</compile_context>

<pallas_src>
import functools

import jax
import jax.numpy as jnp
from jax import lax
from jax.experimental import pallas as pl
from jax.experimental.pallas import tpu as pltpu


# ----------------------------------------------------------------------------
# Fused kernel: distance -> kNN selection -> per-neighbor MXU gather + max
# ----------------------------------------------------------------------------

def _pool_kernel(q_ref, vt_ref, feat_ref, o_ref, *, n_select, v_total):
    """One batch element, one tile of query (sampled) vertices.

    q_ref    : (1, tQ, 3)   query vertices (the randperm-sampled rows)
    vt_ref   : (1, 3, V)    all vertices of this batch element, transposed
    feat_ref : (1, V, C)    full feature map of this batch element
    o_ref    : (1, tQ, C)   pooled features for the query rows
    """
    q = q_ref[0]                                  # (tQ, 3)
    vt = vt_ref[0]                                # (3, V)
    feat = feat_ref[0].astype(jnp.float32)        # (V, C)

    # Pairwise squared distance with the same formula and add-order as the
    # PyTorch reference (-2*<q,v> + |v|^2 + |q|^2), computed as 3 broadcast
    # FMAs on the VPU instead of a depth-3 MXU contraction.
    inner = (q[:, 0:1] * vt[0:1, :]
             + q[:, 1:2] * vt[1:2, :]
             + q[:, 2:3] * vt[2:3, :])                       # (tQ, V)
    quad_q = jnp.sum(q * q, axis=1, keepdims=True)           # (tQ, 1)
    quad_v = jnp.sum(vt * vt, axis=0, keepdims=True)         # (1, V)
    dist = -2.0 * inner + quad_v + quad_q                    # (tQ, V)

    # Iteratively extract the (n_select + 1) smallest distances per query row
    # (k = 0 is the query itself and is only masked out, mirroring
    # torch.topk(dist, k, largest=False)[1][:, :, 1:]).  Each selected neighbor
    # is gathered with a one-hot MXU matmul and folded into a running max, so
    # no (tQ, V, C) intermediate is ever built.
    col = lax.broadcasted_iota(jnp.int32, dist.shape, 1)      # (tQ, V)
    work = dist
    acc = jnp.full((q.shape[0], feat.shape[1]), -jnp.inf, dtype=jnp.float32)
    for k in range(n_select + 1):                             # static, n is small
        minval = jnp.min(work, axis=-1, keepdims=True)        # (tQ, 1)
        first = jnp.min(jnp.where(work == minval, col, v_total),
                        axis=-1, keepdims=True)               # first-argmin index
        onehot = col == first                                  # (tQ, V)
        if k > 0:
            # Exact row gather: one-hot (0/1) x f32 features, f32 accumulation
            # on the MXU (HIGHEST precision so features are not demoted).
            gathered = jnp.dot(onehot.astype(jnp.float32), feat,
                               precision=lax.Precision.HIGHEST,
                               preferred_element_type=jnp.float32)   # (tQ, C)
            acc = jnp.maximum(acc, gathered)
        work = jnp.where(onehot, jnp.inf, work)

    # TODO(synk): if production C < 128 and stores dominate, fold 128/C query
    # rows into the last dim on the wrapper side for lane-dense (vst) output.
    o_ref[0] = acc.astype(o_ref.dtype)


# ----------------------------------------------------------------------------
# Tile sizing / VMEM accounting
# ----------------------------------------------------------------------------

def _vmem_bytes(tile_q, v_total, channels, feat_itemsize):
    """Estimated VMEM for one grid step (double-buffered blocks + live arrays)."""
    blocks = (2 * v_total * channels * feat_itemsize        # feat block (x2 buffers)
              + 2 * 3 * v_total * 4                         # transposed vertices
              + 2 * tile_q * 3 * 4                          # query tile
              + 2 * tile_q * channels * feat_itemsize)      # output tile
    working = (6 * tile_q * v_total * 4                     # dist/work/col/onehot/...
               + 2 * tile_q * channels * 4)                 # acc + gathered
    return blocks + working


def _pick_query_tile(pool_num, v_total, channels, feat_itemsize,
                     budget_bytes=24 * 1024 * 1024):
    """Largest MXU-friendly query tile dividing pool_num under the VMEM budget."""
    def fits(t):
        return _vmem_bytes(t, v_total, channels, feat_itemsize) <= budget_bytes

    # MXU M-dim aligned tiles first (256 for v6e/v7x 256x256 MXU, 128 for v5e).
    for t in (256, 128):
        if pool_num % t == 0 and fits(t):
            return t
    # Small problems: a single tile covering all sampled queries.
    if pool_num <= 256 and fits(pool_num):
        return pool_num
    # Fallback: largest multiple of 8 that divides pool_num and fits.
    t = min(pool_num, 512)
    t -= t % 8
    while t >= 8:
        if pool_num % t == 0 and fits(t):
            return t
        t -= 8
    return pool_num


# ----------------------------------------------------------------------------
# Pool_layer.forward
# ----------------------------------------------------------------------------

def pool_layer(vertices, feature_map, *, pooling_rate=4, neighbor_num=4, key=None):
    """vertices: (bs, V, 3) f32, feature_map: (bs, V, C) f32.
    Returns (vertices_pool (bs, P, 3), feature_map_pool (bs, P, C))."""
    bs, V, _ = vertices.shape
    C = feature_map.shape[-1]
    assert V >= 2 and neighbor_num >= 1
    pool_num = V // pooling_rate
    n_select = min(neighbor_num + 1, V) - 1

    # TODO(synk): torch.randperm -> jax.random.permutation with an explicit key
    # (single permutation shared across the batch, same as the PyTorch module).
    if key is None:
        key = jax.random.PRNGKey(0)
    sample_idx = jax.random.permutation(key, V)[:pool_num]

    vertices_pool = vertices[:, sample_idx, :]               # (bs, P, 3)  tiny gather
    vert_t = jnp.swapaxes(vertices, 1, 2)                    # (bs, 3, V)  lane-major

    feat_itemsize = feature_map.dtype.itemsize
    tile_q = _pick_query_tile(pool_num, V, C, feat_itemsize)
    needed = _vmem_bytes(tile_q, V, C, feat_itemsize)
    # Explicit scoped-VMEM request (>= 32 MiB scoped default on v6e/v7x, raises
    # the 16 MiB v5e default when needed, capped at v7x's 64 MiB physical).
    vmem_limit = int(min(max(2 * needed + (4 << 20), 32 << 20), 64 << 20))

    grid = (bs, pool_num // tile_q)

    flops = bs * pool_num * V * (8 + 2 * n_select * C)       # dist + one-hot gathers
    bytes_accessed = bs * (V * C * feat_itemsize
                           + pool_num * C * feat_itemsize
                           + 3 * V * 4 + 3 * pool_num * 4)
    cost = pl.CostEstimate(flops=int(flops), transcendentals=0,
                           bytes_accessed=int(bytes_accessed))

    kernel = functools.partial(_pool_kernel, n_select=n_select, v_total=V)
    feature_map_pool = pl.pallas_call(
        kernel,
        out_shape=jax.ShapeDtypeStruct((bs, pool_num, C), feature_map.dtype),
        grid=grid,
        in_specs=[
            pl.BlockSpec((1, tile_q, 3), lambda b, t: (b, t, 0)),   # query tile
            # vt/feat are invariant along the inner query-tile axis (batch outer
            # keeps them resident).  TODO(synk): for very large V*C switch these
            # to pipeline_mode=pl.Buffered(1) (or a manual per-batch DMA) to halve
            # their double-buffer footprint on VMEM-scarce v7x.
            pl.BlockSpec((1, 3, V), lambda b, t: (b, 0, 0)),        # all vertices (T)
            pl.BlockSpec((1, V, C), lambda b, t: (b, 0, 0)),        # full feature map
        ],
        out_specs=pl.BlockSpec((1, tile_q, C), lambda b, t: (b, t, 0)),
        compiler_params=pltpu.CompilerParams(
            # TODO(synk): on v7x switch a grid axis to pltpu.CORE_PARALLEL if
            # profiling shows a single busy TensorCore.
            dimension_semantics=("parallel", "parallel"),
            vmem_limit_bytes=vmem_limit),
        cost_estimate=cost,
    )(vertices_pool, vert_t, feature_map)

    return vertices_pool, feature_map_pool


# ----------------------------------------------------------------------------
# Pure-JAX reference (mirrors the PyTorch module) for a tolerance check
# ----------------------------------------------------------------------------

def _pool_layer_reference(vertices, feature_map, pooling_rate, neighbor_num, key):
    bs, V, _ = vertices.shape
    vt = jnp.swapaxes(vertices, 1, 2)
    inner = (vertices[:, :, 0:1] * vt[:, 0:1, :]
             + vertices[:, :, 1:2] * vt[:, 1:2, :]
             + vertices[:, :, 2:3] * vt[:, 2:3, :])
    quad = jnp.sum(vertices * vertices, axis=2)
    dist = -2.0 * inner + quad[:, None, :] + quad[:, :, None]
    k = min(neighbor_num + 1, V)
    _, idx = lax.top_k(-dist, k)
    nidx = idx[:, :, 1:]
    nf = jax.vmap(lambda t, i: t[i])(feature_map, nidx)      # (bs, V, n, C)
    pooled = jnp.max(nf, axis=2)
    pool_num = V // pooling_rate
    sample_idx = jax.random.permutation(key, V)[:pool_num]
    return vertices[:, sample_idx, :], pooled[:, sample_idx, :]


# ----------------------------------------------------------------------------

if __name__ == "__main__":
    BS, V, C = 2, 64, 32
    POOLING_RATE, NEIGHBOR_NUM = 4, 4

    root = jax.random.PRNGKey(0)
    k_vert, k_feat, k_pool = jax.random.split(root, 3)
    vertices = jax.random.normal(k_vert, (BS, V, 3), dtype=jnp.float32)
    feature_map = jax.random.normal(k_feat, (BS, V, C), dtype=jnp.float32)

    v_pool, f_pool = pool_layer(vertices, feature_map,
                                pooling_rate=POOLING_RATE,
                                neighbor_num=NEIGHBOR_NUM,
                                key=k_pool)
    v_pool, f_pool = jax.block_until_ready((v_pool, f_pool))

    P = V // POOLING_RATE
    assert v_pool.shape == (BS, P, 3), v_pool.shape
    assert f_pool.shape == (BS, P, C), f_pool.shape
    assert f_pool.dtype == jnp.float32
    assert bool(jnp.all(jnp.isfinite(f_pool)))

    v_ref, f_ref = _pool_layer_reference(vertices, feature_map,
                                         POOLING_RATE, NEIGHBOR_NUM, k_pool)
    assert bool(jnp.allclose(v_pool, v_ref)), "vertex subsample mismatch"
    assert bool(jnp.allclose(f_pool, f_ref, rtol=1e-5, atol=1e-5)), \
        "pooled feature mismatch vs. pure-JAX reference"

    print("KERNEL_OK")
</pallas_src>

<mosaic_0001>
module attributes {stable_mosaic.version = 11 : i64} {
  func.func @_pool_kernel(%arg0: i32, %arg1: i32, %arg2: memref<1x16x3xf32, #tpu.memory_space<vmem>>, %arg3: memref<1x3x64xf32, #tpu.memory_space<vmem>>, %arg4: memref<1x64x32xf32, #tpu.memory_space<vmem>>, %arg5: memref<1x16x32xf32, #tpu.memory_space<vmem>>) attributes {dimension_semantics = [#tpu.dimension_semantics<parallel>, #tpu.dimension_semantics<parallel>], iteration_bounds = array<i64: 2, 1>, scalar_prefetch = 0 : i64, scratch_operands = 0 : i64, tpu.core_type = #tpu.core_type<tc>, window_params = [{transform_indices = @transform_0, window_bounds = array<i64: 1, 16, 3>}, {transform_indices = @transform_1, window_bounds = array<i64: 1, 3, 64>}, {transform_indices = @transform_2, window_bounds = array<i64: 1, 64, 32>}, {transform_indices = @transform_3, window_bounds = array<i64: 1, 16, 32>}]} {
    %c0 = arith.constant 0 : index
    %c0_0 = arith.constant 0 : index
    %c0_1 = arith.constant 0 : index
    %0 = vector.load %arg2[%c0, %c0_0, %c0_1] : memref<1x16x3xf32, #tpu.memory_space<vmem>>, vector<1x16x3xf32>
    %1 = vector.shape_cast %0 : vector<1x16x3xf32> to vector<16x3xf32>
    %c0_2 = arith.constant 0 : index
    %c0_3 = arith.constant 0 : index
    %c0_4 = arith.constant 0 : index
    %2 = vector.load %arg3[%c0_2, %c0_3, %c0_4] : memref<1x3x64xf32, #tpu.memory_space<vmem>>, vector<1x3x64xf32>
    %3 = vector.shape_cast %2 : vector<1x3x64xf32> to vector<3x64xf32>
    %c0_5 = arith.constant 0 : index
    %c0_6 = arith.constant 0 : index
    %c0_7 = arith.constant 0 : index
    %4 = vector.load %arg4[%c0_5, %c0_6, %c0_7] : memref<1x64x32xf32, #tpu.memory_space<vmem>>, vector<1x64x32xf32>
    %5 = vector.shape_cast %4 : vector<1x64x32xf32> to vector<64x32xf32>
    %6 = vector.extract_strided_slice %1 {offsets = [0, 0], sizes = [16, 1], strides = [1, 1]} : vector<16x3xf32> to vector<16x1xf32>
    %7 = vector.extract_strided_slice %3 {offsets = [0, 0], sizes = [1, 64], strides = [1, 1]} : vector<3x64xf32> to vector<1x64xf32>
    %8 = vector.broadcast %6 : vector<16x1xf32> to vector<16x64xf32>
    %9 = vector.broadcast %7 : vector<1x64xf32> to vector<16x64xf32>
    %10 = arith.mulf %8, %9 : vector<16x64xf32>
    %11 = vector.extract_strided_slice %1 {offsets = [0, 1], sizes = [16, 1], strides = [1, 1]} : vector<16x3xf32> to vector<16x1xf32>
    %12 = vector.extract_strided_slice %3 {offsets = [1, 0], sizes = [1, 64], strides = [1, 1]} : vector<3x64xf32> to vector<1x64xf32>
    %13 = vector.broadcast %11 : vector<16x1xf32> to vector<16x64xf32>
    %14 = vector.broadcast %12 : vector<1x64xf32> to vector<16x64xf32>
    %15 = arith.mulf %13, %14 : vector<16x64xf32>
    %16 = arith.addf %10, %15 : vector<16x64xf32>
    %17 = vector.extract_strided_slice %1 {offsets = [0, 2], sizes = [16, 1], strides = [1, 1]} : vector<16x3xf32> to vector<16x1xf32>
    %18 = vector.extract_strided_slice %3 {offsets = [2, 0], sizes = [1, 64], strides = [1, 1]} : vector<3x64xf32> to vector<1x64xf32>
    %19 = vector.broadcast %17 : vector<16x1xf32> to vector<16x64xf32>
    %20 = vector.broadcast %18 : vector<1x64xf32> to vector<16x64xf32>
    %21 = arith.mulf %19, %20 : vector<16x64xf32>
    %22 = arith.addf %16, %21 : vector<16x64xf32>
    %23 = arith.mulf %1, %1 : vector<16x3xf32>
    %cst = arith.constant dense<0.000000e+00> : vector<16xf32>
    %24 = vector.multi_reduction <add>, %23, %cst [1] : vector<16x3xf32> to vector<16xf32>
    %25 = vector.shape_cast %24 : vector<16xf32> to vector<16x1xf32>
    %26 = arith.mulf %3, %3 : vector<3x64xf32>
    %cst_8 = arith.constant dense<0.000000e+00> : vector<64xf32>
    %27 = vector.multi_reduction <add>, %26, %cst_8 [0] : vector<3x64xf32> to vector<64xf32>
    %28 = vector.shape_cast %27 : vector<64xf32> to vector<1x64xf32>
    %cst_9 = arith.constant -2.000000e+00 : f32
    %29 = vector.broadcast %cst_9 : f32 to vector<16x64xf32>
    %30 = arith.mulf %29, %22 : vector<16x64xf32>
    %31 = vector.broadcast %28 : vector<1x64xf32> to vector<16x64xf32>
    %32 = arith.addf %30, %31 : vector<16x64xf32>
    %33 = vector.broadcast %25 : vector<16x1xf32> to vector<16x64xf32>
    %34 = arith.addf %32, %33 : vector<16x64xf32>
    %35 = tpu.iota {dimensions = array<i32: 1>} : vector<16x64xi32>
    %cst_10 = arith.constant 0xFF800000 : f32
    %36 = vector.broadcast %cst_10 : f32 to vector<16x32xf32>
    %cst_11 = arith.constant dense<0x7F800000> : vector<16xf32>
    %37 = vector.multi_reduction <minimumf>, %34, %cst_11 [1] : vector<16x64xf32> to vector<16xf32>
    %38 = vector.shape_cast %37 : vector<16xf32> to vector<16x1xf32>
    %39 = vector.broadcast %38 : vector<16x1xf32> to vector<16x64xf32>
    %40 = arith.cmpf oeq, %34, %39 : vector<16x64xf32>
    %c64_i32 = arith.constant 64 : i32
    %41 = vector.broadcast %c64_i32 : i32 to vector<16x64xi32>
    %42 = arith.select %40, %35, %41 : vector<16x64xi1>, vector<16x64xi32>
    %cst_12 = arith.constant dense<2147483647> : vector<16xi32>
    %43 = vector.multi_reduction <minsi>, %42, %cst_12 [1] : vector<16x64xi32> to vector<16xi32>
    %44 = vector.shape_cast %43 : vector<16xi32> to vector<16x1xi32>
    %45 = vector.broadcast %44 : vector<16x1xi32> to vector<16x64xi32>
    %46 = arith.cmpi eq, %35, %45 : vector<16x64xi32>
    %cst_13 = arith.constant 0x7F800000 : f32
    %47 = vector.broadcast %cst_13 : f32 to vector<16x64xf32>
    %48 = arith.select %46, %47, %34 : vector<16x64xi1>, vector<16x64xf32>
    %cst_14 = arith.constant dense<0x7F800000> : vector<16xf32>
    %49 = vector.multi_reduction <minimumf>, %48, %cst_14 [1] : vector<16x64xf32> to vector<16xf32>
    %50 = vector.shape_cast %49 : vector<16xf32> to vector<16x1xf32>
    %51 = vector.broadcast %50 : vector<16x1xf32> to vector<16x64xf32>
    %52 = arith.cmpf oeq, %48, %51 : vector<16x64xf32>
    %c64_i32_15 = arith.constant 64 : i32
    %53 = vector.broadcast %c64_i32_15 : i32 to vector<16x64xi32>
    %54 = arith.select %52, %35, %53 : vector<16x64xi1>, vector<16x64xi32>
    %cst_16 = arith.constant dense<2147483647> : vector<16xi32>
    %55 = vector.multi_reduction <minsi>, %54, %cst_16 [1] : vector<16x64xi32> to vector<16xi32>
    %56 = vector.shape_cast %55 : vector<16xi32> to vector<16x1xi32>
    %57 = vector.broadcast %56 : vector<16x1xi32> to vector<16x64xi32>
    %58 = arith.cmpi eq, %35, %57 : vector<16x64xi32>
    %59 = arith.extui %58 : vector<16x64xi1> to vector<16x64xi32>
    %60 = arith.sitofp %59 : vector<16x64xi32> to vector<16x64xf32>
    %cst_17 = arith.constant dense<0.000000e+00> : vector<16x32xf32>
    %61 = tpu.matmul %60, %5, %cst_17 {dimension_numbers = #tpu.dot_dimension_numbers<[1], [0], [0], [1], [0, 0, 1, 1], [], []>, precision = #tpu.contract_precision<fp32>} : vector<16x64xf32>, vector<64x32xf32>, vector<16x32xf32> -> vector<16x32xf32>
    %62 = arith.maximumf %36, %61 : vector<16x32xf32>
    %cst_18 = arith.constant 0x7F800000 : f32
    %63 = vector.broadcast %cst_18 : f32 to vector<16x64xf32>
    %64 = arith.select %58, %63, %48 : vector<16x64xi1>, vector<16x64xf32>
    %cst_19 = arith.constant dense<0x7F800000> : vector<16xf32>
    %65 = vector.multi_reduction <minimumf>, %64, %cst_19 [1] : vector<16x64xf32> to vector<16xf32>
    %66 = vector.shape_cast %65 : vector<16xf32> to vector<16x1xf32>
    %67 = vector.broadcast %66 : vector<16x1xf32> to vector<16x64xf32>
    %68 = arith.cmpf oeq, %64, %67 : vector<16x64xf32>
    %c64_i32_20 = arith.constant 64 : i32
    %69 = vector.broadcast %c64_i32_20 : i32 to vector<16x64xi32>
    %70 = arith.select %68, %35, %69 : vector<16x64xi1>, vector<16x64xi32>
    %cst_21 = arith.constant dense<2147483647> : vector<16xi32>
    %71 = vector.multi_reduction <minsi>, %70, %cst_21 [1] : vector<16x64xi32> to vector<16xi32>
    %72 = vector.shape_cast %71 : vector<16xi32> to vector<16x1xi32>
    %73 = vector.broadcast %72 : vector<16x1xi32> to vector<16x64xi32>
    %74 = arith.cmpi eq, %35, %73 : vector<16x64xi32>
    %75 = arith.extui %74 : vector<16x64xi1> to vector<16x64xi32>
    %76 = arith.sitofp %75 : vector<16x64xi32> to vector<16x64xf32>
    %cst_22 = arith.constant dense<0.000000e+00> : vector<16x32xf32>
    %77 = tpu.matmul %76, %5, %cst_22 {dimension_numbers = #tpu.dot_dimension_numbers<[1], [0], [0], [1], [0, 0, 1, 1], [], []>, precision = #tpu.contract_precision<fp32>} : vector<16x64xf32>, vector<64x32xf32>, vector<16x32xf32> -> vector<16x32xf32>
    %78 = arith.maximumf %62, %77 : vector<16x32xf32>
    %cst_23 = arith.constant 0x7F800000 : f32
    %79 = vector.broadcast %cst_23 : f32 to vector<16x64xf32>
    %80 = arith.select %74, %79, %64 : vector<16x64xi1>, vector<16x64xf32>
    %cst_24 = arith.constant dense<0x7F800000> : vector<16xf32>
    %81 = vector.multi_reduction <minimumf>, %80, %cst_24 [1] : vector<16x64xf32> to vector<16xf32>
    %82 = vector.shape_cast %81 : vector<16xf32> to vector<16x1xf32>
    %83 = vector.broadcast %82 : vector<16x1xf32> to vector<16x64xf32>
    %84 = arith.cmpf oeq, %80, %83 : vector<16x64xf32>
    %c64_i32_25 = arith.constant 64 : i32
    %85 = vector.broadcast %c64_i32_25 : i32 to vector<16x64xi32>
    %86 = arith.select %84, %35, %85 : vector<16x64xi1>, vector<16x64xi32>
    %cst_26 = arith.constant dense<2147483647> : vector<16xi32>
    %87 = vector.multi_reduction <minsi>, %86, %cst_26 [1] : vector<16x64xi32> to vector<16xi32>
    %88 = vector.shape_cast %87 : vector<16xi32> to vector<16x1xi32>
    %89 = vector.broadcast %88 : vector<16x1xi32> to vector<16x64xi32>
    %90 = arith.cmpi eq, %35, %89 : vector<16x64xi32>
    %91 = arith.extui %90 : vector<16x64xi1> to vector<16x64xi32>
    %92 = arith.sitofp %91 : vector<16x64xi32> to vector<16x64xf32>
    %cst_27 = arith.constant dense<0.000000e+00> : vector<16x32xf32>
    %93 = tpu.matmul %92, %5, %cst_27 {dimension_numbers = #tpu.dot_dimension_numbers<[1], [0], [0], [1], [0, 0, 1, 1], [], []>, precision = #tpu.contract_precision<fp32>} : vector<16x64xf32>, vector<64x32xf32>, vector<16x32xf32> -> vector<16x32xf32>
    %94 = arith.maximumf %78, %93 : vector<16x32xf32>
    %cst_28 = arith.constant 0x7F800000 : f32
    %95 = vector.broadcast %cst_28 : f32 to vector<16x64xf32>
    %96 = arith.select %90, %95, %80 : vector<16x64xi1>, vector<16x64xf32>
    %cst_29 = arith.constant dense<0x7F800000> : vector<16xf32>
    %97 = vector.multi_reduction <minimumf>, %96, %cst_29 [1] : vector<16x64xf32> to vector<16xf32>
    %98 = vector.shape_cast %97 : vector<16xf32> to vector<16x1xf32>
    %99 = vector.broadcast %98 : vector<16x1xf32> to vector<16x64xf32>
    %100 = arith.cmpf oeq, %96, %99 : vector<16x64xf32>
    %c64_i32_30 = arith.constant 64 : i32
    %101 = vector.broadcast %c64_i32_30 : i32 to vector<16x64xi32>
    %102 = arith.select %100, %35, %101 : vector<16x64xi1>, vector<16x64xi32>
    %cst_31 = arith.constant dense<2147483647> : vector<16xi32>
    %103 = vector.multi_reduction <minsi>, %102, %cst_31 [1] : vector<16x64xi32> to vector<16xi32>
    %104 = vector.shape_cast %103 : vector<16xi32> to vector<16x1xi32>
    %105 = vector.broadcast %104 : vector<16x1xi32> to vector<16x64xi32>
    %106 = arith.cmpi eq, %35, %105 : vector<16x64xi32>
    %107 = arith.extui %106 : vector<16x64xi1> to vector<16x64xi32>
    %108 = arith.sitofp %107 : vector<16x64xi32> to vector<16x64xf32>
    %cst_32 = arith.constant dense<0.000000e+00> : vector<16x32xf32>
    %109 = tpu.matmul %108, %5, %cst_32 {dimension_numbers = #tpu.dot_dimension_numbers<[1], [0], [0], [1], [0, 0, 1, 1], [], []>, precision = #tpu.contract_precision<fp32>} : vector<16x64xf32>, vector<64x32xf32>, vector<16x32xf32> -> vector<16x32xf32>
    %110 = arith.maximumf %94, %109 : vector<16x32xf32>
    %c0_33 = arith.constant 0 : index
    %c0_34 = arith.constant 0 : index
    %c0_35 = arith.constant 0 : index
    %111 = vector.load %arg5[%c0_33, %c0_34, %c0_35] : memref<1x16x32xf32, #tpu.memory_space<vmem>>, vector<1x16x32xf32>
    %112 = vector.shape_cast %111 : vector<1x16x32xf32> to vector<16x32xf32>
    %113 = vector.shape_cast %110 : vector<16x32xf32> to vector<1x16x32xf32>
    tpu.vector_store %arg5[%c0_33, %c0_34, %c0_35], %113 {strides = array<i32>} : memref<1x16x32xf32, #tpu.memory_space<vmem>>, vector<1x16x32xf32>,
    return
  }
  func.func @transform_0(%arg0: i32, %arg1: i32) -> (i32, i32, i32) {
    %c0_i32 = arith.constant 0 : i32
    %c0_i32_0 = arith.constant 0 : i32
    return %arg0, %arg1, %c0_i32 : i32, i32, i32
  }
  func.func @transform_1(%arg0: i32, %arg1: i32) -> (i32, i32, i32) {
    %c0_i32 = arith.constant 0 : i32
    %c0_i32_0 = arith.constant 0 : i32
    %c0_i32_1 = arith.constant 0 : i32
    return %arg0, %c0_i32, %c0_i32_0 : i32, i32, i32
  }
  func.func @transform_2(%arg0: i32, %arg1: i32) -> (i32, i32, i32) {
    %c0_i32 = arith.constant 0 : i32
    %c0_i32_0 = arith.constant 0 : i32
    %c0_i32_1 = arith.constant 0 : i32
    return %arg0, %c0_i32, %c0_i32_0 : i32, i32, i32
  }
  func.func @transform_3(%arg0: i32, %arg1: i32) -> (i32, i32, i32) {
    %c0_i32 = arith.constant 0 : i32
    %c0_i32_0 = arith.constant 0 : i32
    return %arg0, %arg1, %c0_i32 : i32, i32, i32
  }
}

</mosaic_0001>

<bundles_post_ra>
// kernel: tpu_custom_call.1
= control target key start
LH: loop header
LB: loop body
LE: loop exit
PB: predicated region body
PF: predicated region fallthrough
CT: control target
= control target key end

     0   :  { %8 = vsyncpa [#allocation3], 0  ;;  %s4932_s0 = inlined_call_operand.vmem [shape: f32[2,16,3], index: 0, kind: input, shape index: {}]   ;;  %s4933_s1 = inlined_call_operand.vmem [shape: f32[2,3,64], index: 1, kind: input, shape index: {}]   ;;  %s4934_s2 = inlined_call_operand.vmem [shape: f32[2,64,32], index: 2, kind: input, shape index: {}]   ;;  %s4935_s3 = inlined_call_operand.hbm [shape: f32[2,16,32], index: 3, kind: output, shape index: {}]  }
   0x1   :  { %10 = vsyncpa [#allocation3 + $0x1], 0  ;;  %s4374_s12 = smov 0   ;;  %s4376_s13 = smov 0  }
   0x2   :  { %s4378_s14 = smov 0   ;;  %s4380_s15 = smov 0  }
   0x3   :  { %s4382_s16 = smov 0   ;;  %s4384_s17 = smov 0  }
   0x4 LB: > { %s3029_s18 = sadd.s32 4294967295, %s4345_s17   ;;  %s3030_s19 = sadd.s32 4294967294, %s4345_s17   ;;  %s4345_s17 = sphi %s4384_s17, %s16_s17   ;;  %s4341_s16 = sphi %s4382_s16, %s4942_s16   ;;  %s4337_s15 = sphi %s4380_s15, %s4941_s15   ;;  %s4333_s14 = sphi %s4378_s14, %s4940_s14   ;;  %s4329_s13 = sphi %s4376_s13, %s4939_s13   ;;  %s4325_s12 = sphi %s4374_s12, %s4938_s12  }
   0x5   : > { %s28_s20 = sadd.s32 1, %s4341_s16  ;;  %s117_s21 = sadd.s32 1, %s4333_s14 }
   0x6   : > { %p30_p0 = scmp.ge.s32.totalorder %s28_s20, 2  ;;  %p127_p1 = scmp.ne.s32.totalorder %s4333_s14, %s4329_s13 }
   0x7   : > { %p128_p2 = scmp.eq.s32.totalorder %s3029_s18, 1  ;;  %p133_p3 = scmp.ne.s32.totalorder %s4329_s13, %s4325_s12 }
   0x8   : > { %s4944_s20 = smov (%p30_p0, %s28_s20), 0  ;;  %p134_p5 = scmp.eq.s32.totalorder %s3030_s19, 1 }
   0x9   : > { %p4414_p4 = por %p128_p2, %p127_p1  ;;  %s112_s23 = ssub.s32 %s4341_s16, %s4944_s20 }
   0xa   : > { %p3033_p6 = scmp.ge.s32.totalorder %s4345_s17, 1  ;;  %p115_p7 = scmp.eq.s32.totalorder %s112_s23, 0 }
   0xb   : > { %p4421_p8 = por %p134_p5, %p133_p3  ;;  %p180_p9 = scmp.lt.s32.totalorder %s4345_s17, 3 }
   0xc   : > { %s4427_s25 = scalar_select %p115_p7, %s4333_s14, %s117_s21  }
   0xd   : > { %p181_p10 = pnand %p3033_p6, %p180_p9 }
   0xe   : > { %p218_p11 = scmp.lt.s32.totalorder (!%p181_p10), %s4337_s15, 1  ;;  %v4347_v0 = vmov (!%p181_p10), 0   ;;  %v4348_v26 = vmov (!%p181_p10), 1   ;;  %v4349_v31 = vmov (!%p181_p10), 2   ;;  %vm298_vm0 = vcmask (!%p181_p10), 23552   ;;  %s214_s18 = sand.u32 (!%p181_p10), 1, %s4329_s13  }
   0xf   : > { %184 = sbr.rel (%p181_p10) target bundleno = 2747 (0xabb), region = 32  ;;  %4263 = vset.pattern.permute.xlu1 (!%p181_p10), %v4347_v0  ;;  %4261 = vset.pattern.permute.xlu0 (!%p181_p10), %v4347_v0  ;;  %vm306_vm1 = vcmask (!%p181_p10), 518144   ;;  %v258_v39 = vlaneseq (!%p181_p10)  ;;  %vm322_vm2 = vcmask (!%p181_p10), 523264   ;;  %s3034_s19 = sshll.u32 (!%p181_p10), %s214_s18, 4 }
  0x10   : > { %s216_s21 = scalar_lea.vmem (!%p181_p10), [#allocation2], %s3034_s19 }
  0x11   : > { %v259_v44 = vshrl.u32 (!%p181_p10), %v258_v39, 7  ;;  %s2926_s23 = sshll.u32 (!%p181_p10), %s216_s21, 4  ;;  %s4878_s23 = int_to_ptr.vmem [resolvable:$true] %s2926_s23 }
  0x12   : > { %s4267_s30 = scalar_lea.vmem (!%p181_p10), %s4878_s23, 256 }
  0x13   : > { %v274_v45 = vsub.s32 (!%p181_p10), 1, %v259_v44  ;;  %v260_v48 = vsub.s32 (!%p181_p10), 0, %v259_v44  ;;  %v290_v49 = vsub.s32 (!%p181_p10), 2, %v259_v44  ;;  %p4268_p12 = scmp.ne.s32.totalorder (!%p181_p10), %s4878_s23, %s4267_s30 }
  0x15   : > { %p4269_p13 = pnand (!%p181_p10), %p4268_p12, %p4414_p4 }
  0x16   : > { %s4431_s26 = scalar_select %p218_p11, %s4337_s15, 1 }
  0x17   : > { %p4270_p0 = pneg %p4269_p13 }
  0x18   : > { %s3077_s27 = sshll.u32 %s4431_s26, 4  ;;  %s3078_s28 = sshll.u32 %s4431_s26, 6 }
  0x19   : > { %s225_s4 = scalar_lea.vmem %s4932_s0, %s3077_s27  ;;  %s235_s7 = scalar_lea.vmem %s4934_s2, %s3078_s28 }
  0x1a   : > { %v238_v1 = vld [vmem:[%s225_s4 + $0x8] sm:$0xff]  ;;  %v240_v2 = vld [vmem:[%s235_s7] sm:$0xff]  ;;  %v242_v4 = vld [vmem:[%s235_s7 + $0x10] sm:$0xff]  ;;  %s3037_s8 = sshll.u32 %s4431_s26, 2  ;;  %s3079_s26 = sshll.u32 %s4337_s15, 8 }
  0x1b   : > { %v241_v3 = vld [vmem:[%s235_s7 + $0x8] sm:$0xff]  ;;  %v243_v5 = vld [vmem:[%s235_s7 + $0x18] sm:$0xff]  ;;  %v244_v6 = vld [vmem:[%s235_s7 + $0x20] sm:$0xff]  ;;  %v420_v7 = vand.u32 4294901760, %v240_v2  ;;  %255 = vperm.xlu1 %4263, %v238_v1   ;;  %v426_v12 = vand.u32 4294901760, %v242_v4  ;;  %v297_v33 = vmul.f32 %v238_v1, %v238_v1  ;;  %s230_s11 = scalar_lea.vmem %s4933_s1, %s3037_s8  ;;  %s4883_s29 = scalar_lea.hbm %s4935_s3, %s3079_s26 }
  0x1c   : > { %v423_v8 = vand.u32 4294901760, %v241_v3  ;;  %v245_v9 = vld [vmem:[%s235_s7 + $0x28] sm:$0xff]  ;;  %v246_v10 = vld [vmem:[%s235_s7 + $0x30] sm:$0xff]  ;;  %v247_v11 = vld [vmem:[%s235_s7 + $0x38] sm:$0xff]  ;;  %v429_v13 = vand.u32 4294901760, %v243_v5  ;;  %v432_v15 = vand.u32 4294901760, %v244_v6 }
  0x1d   : > { %v435_v16 = vand.u32 4294901760, %v245_v9  ;;  %v237_v17 = vld [vmem:[%s225_s4] sm:$0xff]  ;;  %v4445_v19 = vsub.f32 %v240_v2, %v420_v7  ;;  %v4449_v21 = vsub.f32 %v242_v4, %v426_v12  ;;  %v438_v22 = vand.u32 4294901760, %v246_v10  ;;  %s4886_s15 = scalar_lea.sflag [#allocation3], %s214_s18  ;;  %s4351_s4 = smov [#allocation2]  }
  0x1e   : > { %v4441_v14 = vpack.c.bf16 %v423_v8, %v420_v7  ;;  %v4443_v18 = vpack.c.bf16 %v429_v13, %v426_v12  ;;  %v4447_v20 = vsub.f32 %v241_v3, %v423_v8  ;;  %250 = vperm.xlu0 %4261, %v237_v17   ;;  %v441_v23 = vand.u32 4294901760, %v247_v11  ;;  %v239_v37 = vld [vmem:[%s230_s11] sm:$0x7]  ;;  %s4271_s5 = sshll.u32 %s4351_s4, 4  ;;  %s4272_s5 = int_to_ptr.vmem [resolvable:$false] %s4271_s5 }
  0x1f   : > { %v4451_v24 = vsub.f32 %v243_v5, %v429_v13  ;;  %v4453_v25 = vsub.f32 %v244_v6, %v432_v15  ;;  %4264 = vset.pattern.permute.xlu1 %v4348_v26  ;;  %v4455_v27 = vsub.f32 %v245_v9, %v435_v16  ;;  %v4458_v28 = vsub.f32 %v246_v10, %v438_v22  ;;  %s4273_s6 = scalar_lea.vmem %s4272_s5, 512  ;;  %p4274_p1 = scmp.lt.s32.totalorder %s4878_s23, %s4272_s5 }
  0x20   : > { %269 = vperm.xlu1 %4264, %v238_v1   ;;  %3777 = vmatprep.subr.bf16.mxu0 %v4441_v14  ;;  %v4460_v29 = vsub.f32 %v247_v11, %v441_v23  ;;  %v4464_v30 = vpack.c.bf16 %v435_v16, %v432_v15  ;;  %v4470_v32 = vpack.c.bf16 %v441_v23, %v438_v22  ;;  %v302_v35 = vsel %vm298_vm0, %v297_v33, 0.0  ;;  %p4275_p2 = scmp.lt.s32.totalorder %s4273_s6, %s4267_s30 }
  0x21   : > { %3779 = vmatpush3.bf16.msra.mxu0 %v4441_v14  ;;  %3873 = vmatprep.subr.bf16.mxu1 %v4441_v14  ;;  %v296_v34 = vmul.f32 %v237_v17, %v237_v17  ;;  %v305_v38 = vmul.f32 %v239_v37, %v239_v37  ;;  %v275_v51 = vrot.slane %v239_v37, %v274_v45 }
  0x22   : > { %4262 = vset.pattern.permute.xlu0 %v4348_v26  ;;  %3781 = vmatprep.subr.bf16.mxu0 %v4443_v18  ;;  %v261_v53 = vrot.slane %v239_v37, %v260_v48  ;;  %v291_v54 = vrot.slane %v239_v37, %v290_v49  ;;  %p4276_p3 = por %p4275_p2, %p4274_p1 }
  0x23   : > { %265 = vperm.xlu0 %4262, %v237_v17   ;;  %3875 = vmatpush3.bf16.msra.mxu1 %v4441_v14  ;;  %v299_v36 = vsel %vm298_vm0, %v296_v34, 0.0  ;;  %v307_v40 = vsel %vm306_vm1, %v305_v38, 0.0 }
  0x24   : > { %4265 = vset.pattern.permute.xlu1 %v4349_v31  ;;  %3877 = vmatprep.subr.bf16.mxu1 %v4443_v18  ;;  %v308_v43 = vrot.slane %v307_v40, 4  ;;  %p4277_p5 = pnand %p4276_p3, %p4270_p0 }
  0x25   : > { %281 = vperm.xlu1 %4265, %v237_v17   ;;  %3783 = vmatpush3.bf16.msra.mxu0 %v4443_v18  ;;  %v4487_v17 = vand.u32 127, %v258_v39 }
  0x26   : > { %3785 = vmatprep.subr.bf16.mxu0 %v4464_v30  ;;  %v309_v47 = vadd.f32 %v308_v43, %v307_v40 }
  0x27   : > { %4266 = vset.pattern.permute.xlu0 %v4349_v31  ;;  %3879 = vmatpush3.bf16.msra.mxu1 %v4443_v18 }
  0x28   : > { %285 = vperm.xlu0 %4266, %v238_v1   ;;  %3881 = vmatprep.subr.bf16.mxu1 %v4464_v30  ;;  %v310_v52 = vrot.slane %v309_v47, 2 }
  0x29   : > { %3787 = vmatpush3.bf16.msra.mxu0 %v4464_v30 }
  0x2a   : > { %3789 = vmatprep.subr.bf16.mxu0 %v4470_v32  ;;  %v311_v58 = vadd.f32 %v310_v52, %v309_v47 }
  0x2b   : > { %3883 = vmatpush3.bf16.msra.mxu1 %v4464_v30 }
  0x2c   : > { %3885 = vmatprep.subr.bf16.mxu1 %v4470_v32  ;;  %v312_v3 = vrot.slane %v311_v58, 1 }
  0x2d   : > { %3791 = vmatpush3.bf16.msra.mxu0 %v4470_v32 }
  0x2e   : > { %v313_v6 = vadd.f32 %v312_v3, %v311_v58 }
  0x2f   : > { %3887 = vmatpush3.bf16.msra.mxu1 %v4470_v32 }
  0x47   : > { %303 = vadd.xlane.f32.xlu0 %v302_v35 }
  0x49   : > { %300 = vadd.xlane.f32.xlu1 %v299_v36 }
  0x9a   : > { %v256_v42 = vpop.permute.xlu1 %255 }
  0x9b   : > { %v263_v59 = vmul.f32 %v261_v53, %v256_v42 }
  0x9d   : > { %v251_v41 = vpop.permute.xlu0 %250 }
  0x9e   : > { %v262_v60 = vmul.f32 %v261_v53, %v251_v41 }
  0x9f   : > { %v270_v50 = vpop.permute.xlu1 %269 }
  0xa0   : > { %v277_v56 = vmul.f32 %v275_v51, %v270_v50 }
  0xa2   : > { %v266_v46 = vpop.permute.xlu0 %265  ;;  %v279_v63 = vadd.f32 %v277_v56, %v263_v59 }
  0xa3   : > { %v276_v61 = vmul.f32 %v275_v51, %v266_v46 }
  0xa4   : > { %v282_v57 = vpop.permute.xlu1 %281 }
  0xa5   : > { %v292_v0 = vmul.f32 %v291_v54, %v282_v57  ;;  %v278_v1 = vadd.f32 %v276_v61, %v262_v60 }
  0xa7   : > { %v286_v55 = vpop.permute.xlu0 %285  ;;  %v294_v4 = vadd.f32 %v292_v0, %v278_v1 }
  0xa8   : > { %v293_v62 = vmul.f32 %v291_v54, %v286_v55 }
  0xa9   : > { %v314_v7 = vmul.f32 -2.0, %v294_v4 }
  0xaa   : > { %v295_v2 = vadd.f32 %v293_v62, %v279_v63 }
  0xab   : > { %v316_v11 = vadd.f32 %v314_v7, %v313_v6 }
  0xac   : > { %v315_v5 = vmul.f32 -2.0, %v295_v2 }
  0xae   : > { %v317_v8 = vadd.f32 %v315_v5, %v313_v6 }
  0xd4   : > { %v304_v9 = vpop.xlane.xlu0 %303 }
  0xd5   : > { %v319_v10 = vadd.f32 %v317_v8, %v304_v9 }
  0xd6   : > { %v301_v12 = vpop.xlane.xlu1 %300 }
  0xd7   : > { %v326_v13 = vsel %vm322_vm2, %v319_v10, inf  ;;  %v318_v15 = vadd.f32 %v316_v11, %v301_v12 }
  0xd8   : > { %327 = vmin.xlane.f32.xlu0 %v326_v13 }
  0xd9   : > { %v323_v16 = vsel %vm322_vm2, %v318_v15, inf }
  0xda   : > { %324 = vmin.xlane.f32.xlu1 %v323_v16  ;;  %v515_v16 = vand.u32 4294901760, %v4445_v19 }
 0x165   : > { %v328_v22 = vpop.xlane.xlu0 %327 }
 0x166   : > { %vm330_vm3 = vcmp.eq.f32.partialorder %v319_v10, %v328_v22  ;;  %v522_v22 = vand.u32 4294901760, %v4447_v20 }
 0x167   : > { %v332_v23 = vsel %vm330_vm3, %v4487_v17, 64  ;;  %v325_v26 = vpop.xlane.xlu1 %324 }
 0x168   : > { %v348_v31 = vsel %vm322_vm2, %v332_v23, 2147483647  ;;  %vm329_vm4 = vcmp.eq.f32.partialorder %v318_v15, %v325_v26  ;;  %v529_v23 = vand.u32 4294901760, %v4449_v21  ;;  %v536_v26 = vand.u32 4294901760, %v4451_v24 }
 0x169   : > { %v331_v33 = vsel %vm329_vm4, %v4487_v17, 64  ;;  %v350_v34 = vshra.s32 %v348_v31, 16  ;;  %v349_v39 = vand.u32 65535, %v348_v31  ;;  %v516_v31 = vsub.f32 %v4445_v19, %v515_v16 }
 0x16a   : > { %v333_v35 = vsel %vm322_vm2, %v331_v33, 2147483647  ;;  %v523_v33 = vsub.f32 %v4447_v20, %v522_v22 }
 0x16b   : > { %v352_v36 = vcvt.s32.f32 %v350_v34  ;;  %v335_v37 = vshra.s32 %v333_v35, 16  ;;  %v334_v40 = vand.u32 65535, %v333_v35  ;;  %v351_v42 = vcvt.s32.f32 %v349_v39 }
 0x16c   : > { %v517_v34 = vand.u32 4294901760, %v516_v31  ;;  %v524_v35 = vand.u32 4294901760, %v523_v33  ;;  %v530_v39 = vsub.f32 %v4449_v21, %v529_v23 }
 0x16d   : > { %353 = vmin.xlane.f32.xlu0 %v352_v36  ;;  %v337_v38 = vcvt.s32.f32 %v335_v37  ;;  %v336_v45 = vcvt.s32.f32 %v334_v40  ;;  %v550_v37 = vand.u32 4294901760, %v4455_v27  ;;  %v537_v40 = vsub.f32 %v4451_v24, %v536_v26 }
 0x16f   : > { %338 = vmin.xlane.f32.xlu1 %v337_v38 }
 0x1fa   : > { %v354_v41 = vpop.xlane.xlu0 %353 }
 0x1fb   : > { %vm355_vm5 = vcmp.eq.f32.partialorder %v352_v36, %v354_v41  ;;  %v360_v47 = vcvt.f32.s32 %v354_v41  ;;  %v543_v36 = vand.u32 4294901760, %v4453_v25  ;;  %v531_v41 = vand.u32 4294901760, %v530_v39 }
 0x1fc   : > { %v356_v43 = vsel %vm355_vm5, %v351_v42, inf  ;;  %v339_v44 = vpop.xlane.xlu1 %338  ;;  %v538_v42 = vand.u32 4294901760, %v537_v40 }
 0x1fd   : > { %357 = vmin.xlane.f32.xlu0 %v356_v43  ;;  %vm340_vm6 = vcmp.eq.f32.partialorder %v337_v38, %v339_v44  ;;  %v345_v48 = vcvt.f32.s32 %v339_v44  ;;  %v361_v50 = vshll.u32 %v360_v47, 16  ;;  %v4517_v38 = vpack.c.bf16 %v524_v35, %v517_v34 }
 0x1fe   : > { %v341_v46 = vsel %vm340_vm6, %v336_v45, inf  ;;  %v557_v43 = vand.u32 4294901760, %v4458_v28  ;;  %v564_v44 = vand.u32 4294901760, %v4460_v29  ;;  %v4525_v45 = vpack.c.bf16 %v538_v42, %v531_v41 }
 0x1ff   : > { %342 = vmin.xlane.f32.xlu1 %v341_v46  ;;  %v346_v53 = vshll.u32 %v345_v48, 16  ;;  %3793 = vmatprep.subr.bf16.mxu0 %v4517_v38  ;;  %v544_v46 = vsub.f32 %v4453_v25, %v543_v36  ;;  %v551_v47 = vsub.f32 %v4455_v27, %v550_v37 }
 0x200   : > { %3889 = vmatprep.subr.bf16.mxu1 %v4517_v38 }
 0x201   : > { %v545_v48 = vand.u32 4294901760, %v544_v46 }
 0x28a   : > { %v358_v49 = vpop.xlane.xlu0 %357 }
 0x28b   : > { %v359_v51 = vcvt.f32.s32 %v358_v49  ;;  %v552_v49 = vand.u32 4294901760, %v551_v47 }
 0x28c   : > { %v343_v52 = vpop.xlane.xlu1 %342 }
 0x28d   : > { %v362_v54 = vadd.s32 %v361_v50, %v359_v51  ;;  %v344_v55 = vcvt.f32.s32 %v343_v52  ;;  %v4529_v50 = vpack.c.bf16 %v552_v49, %v545_v48  ;;  %v558_v51 = vsub.f32 %v4458_v28, %v557_v43 }
 0x28e   : > { %v565_v52 = vsub.f32 %v4460_v29, %v564_v44 }
 0x28f   : > { %v347_v56 = vadd.s32 %v346_v53, %v344_v55  ;;  %vm364_vm7 = vcmp.eq.s32.totalorder %v4487_v17, %v362_v54  ;;  %v559_v53 = vand.u32 4294901760, %v558_v51 }
 0x290   : > { %v4494_v57 = vsel %vm364_vm7, inf, %v319_v10  ;;  %v566_v54 = vand.u32 4294901760, %v565_v52 }
 0x291   : > { %v370_v58 = vsel %vm322_vm2, %v4494_v57, inf  ;;  %vm363_vm8 = vcmp.eq.s32.totalorder %v4487_v17, %v347_v56  ;;  %v4537_v56 = vpack.c.bf16 %v4451_v24, %v4449_v21 }
 0x292   : > { %371 = vmin.xlane.f32.xlu0 %v370_v58  ;;  %v4499_v59 = vsel %vm363_vm8, inf, %v318_v15  ;;  %v4533_v55 = vpack.c.bf16 %v566_v54, %v559_v53  ;;  %v4541_v58 = vpack.c.bf16 %v4455_v27, %v4453_v25 }
 0x293   : > { %v367_v60 = vsel %vm322_vm2, %v4499_v59, inf }
 0x294   : > { %368 = vmin.xlane.f32.xlu1 %v367_v60  ;;  %v4545_v60 = vpack.c.bf16 %v4460_v29, %v4458_v28  ;;  %v4350_v29 = vmov 0.0  }
 0x31f   : > { %v372_v61 = vpop.xlane.xlu0 %371 }
 0x320   : > { %vm374_vm9 = vcmp.eq.f32.partialorder %v4494_v57, %v372_v61  ;;  %v4547_v61 = vpack.c.bf16 %v522_v22, %v515_v16 }
 0x321   : > { %v376_v62 = vsel %vm374_vm9, %v4487_v17, 64  ;;  %v369_v63 = vpop.xlane.xlu1 %368 }
 0x322   : > { %v392_v0 = vsel %vm322_vm2, %v376_v62, 2147483647  ;;  %vm373_vm10 = vcmp.eq.f32.partialorder %v4499_v59, %v369_v63  ;;  %v4549_v62 = vpack.c.bf16 %v536_v26, %v529_v23  ;;  %v4551_v63 = vpack.c.bf16 %v550_v37, %v543_v36 }
 0x323   : > { %v375_v1 = vsel %vm373_vm10, %v4487_v17, 64  ;;  %v394_v2 = vshra.s32 %v392_v0, 16  ;;  %v393_v7 = vand.u32 65535, %v392_v0  ;;  %v4553_v0 = vpack.c.bf16 %v564_v44, %v557_v43 }
 0x324   : > { %v377_v3 = vsel %vm322_vm2, %v375_v1, 2147483647 }
 0x325   : > { %v396_v4 = vcvt.s32.f32 %v394_v2  ;;  %v379_v5 = vshra.s32 %v377_v3, 16  ;;  %v378_v8 = vand.u32 65535, %v377_v3  ;;  %v395_v10 = vcvt.s32.f32 %v393_v7 }
 0x327   : > { %397 = vmin.xlane.f32.xlu0 %v396_v4  ;;  %v381_v6 = vcvt.s32.f32 %v379_v5  ;;  %v380_v13 = vcvt.s32.f32 %v378_v8 }
 0x329   : > { %382 = vmin.xlane.f32.xlu1 %v381_v6 }
 0x3b4   : > { %v398_v9 = vpop.xlane.xlu0 %397 }
 0x3b5   : > { %vm399_vm11 = vcmp.eq.f32.partialorder %v396_v4, %v398_v9  ;;  %v404_v1 = vcvt.f32.s32 %v398_v9 }
 0x3b6   : > { %v400_v11 = vsel %vm399_vm11, %v395_v10, inf  ;;  %v383_v12 = vpop.xlane.xlu1 %382 }
 0x3b7   : > { %401 = vmin.xlane.f32.xlu0 %v400_v11  ;;  %vm384_vm12 = vcmp.eq.f32.partialorder %v381_v6, %v383_v12  ;;  %v389_v2 = vcvt.f32.s32 %v383_v12  ;;  %v405_v24 = vshll.u32 %v404_v1, 16 }
 0x3b8   : > { %v385_v15 = vsel %vm384_vm12, %v380_v13, inf }
 0x3b9   : > { %386 = vmin.xlane.f32.xlu1 %v385_v15  ;;  %v390_v25 = vshll.u32 %v389_v2, 16 }
 0x444   : > { %v402_v21 = vpop.xlane.xlu0 %401 }
 0x445   : > { %v403_v3 = vcvt.f32.s32 %v402_v21 }
 0x446   : > { %v387_v4 = vpop.xlane.xlu1 %386 }
 0x447   : > { %v406_v27 = vadd.s32 %v405_v24, %v403_v3  ;;  %v388_v5 = vcvt.f32.s32 %v387_v4 }
 0x449   : > { %v391_v6 = vadd.s32 %v390_v25, %v388_v5  ;;  %vm408_vm13 = vcmp.eq.s32.totalorder %v4487_v17, %v406_v27 }
 0x44a   : > { %v4557_v28 = vsel %vm408_vm13, inf, %v4494_v57  ;;  %v4560_v7 = vsel %vm408_vm13, 1.0, %v4350_v29 }
 0x44b   : > { %v1004_v8 = vsel %vm322_vm2, %v4557_v28, inf  ;;  %v417_v9 = vsel %vm322_vm2, %v4560_v7, 0  ;;  %vm407_vm14 = vcmp.eq.s32.totalorder %v4487_v17, %v391_v6 }
 0x44c   : > { %1005 = vmin.xlane.f32.xlu0 %v1004_v8  ;;  %v4568_v10 = vsel %vm407_vm14, inf, %v4499_v59  ;;  %v3040_v11 = vsel %vm407_vm14, 1.0, %v4350_v29  ;;  %v503_v57 = vsub.f32 %v417_v9, %v417_v9  ;;  %v4583_v59 = vpack.c.bf16 %v4447_v20, %v4445_v19 }
 0x44d   : > { %v1001_v12 = vsel %vm322_vm2, %v4568_v10, inf  ;;  %v414_v13 = vsel %vm322_vm2, %v3040_v11, 0 }
 0x44e   : > { %1002 = vmin.xlane.f32.xlu1 %v1001_v12  ;;  %v493_v15 = vsub.f32 %v414_v13, %v414_v13  ;;  %v504_v16 = vand.u32 4294901760, %v503_v57 }
 0x450   : > { %v494_v22 = vand.u32 4294901760, %v493_v15  ;;  %v505_v23 = vsub.f32 %v503_v57, %v504_v16 }
 0x452   : > { %v495_v26 = vsub.f32 %v493_v15, %v494_v22  ;;  %v506_v33 = vand.u32 4294901760, %v505_v23 }
 0x454   : > { %v496_v31 = vand.u32 4294901760, %v495_v26 }
 0x456   : > { %3336 = vmatprep.mubr.f32.mxu0 %v496_v31 }
 0x457   : > { %3337 = vmatmul.mubr.f32.vlgmr.msra.gmra.mrb[0].mxu0 %v506_v33 }
 0x458   : > { %3795 = vmatpush3.bf16.msra.mxu0 %v4517_v38  ;;  %3355 = vmatprep.mubr.msk.f32.mxu0 %vm322_vm2, %v3040_v11 }
 0x459   : > { %3797 = vmatprep.subr.bf16.mxu0 %v4525_v45 }
 0x45c   : > { %3799 = vmatpush3.bf16.msra.mxu0 %v4525_v45 }
 0x45d   : > { %3801 = vmatprep.subr.bf16.mxu0 %v4529_v50 }
 0x460   : > { %3803 = vmatpush3.bf16.msra.mxu0 %v4529_v50 }
 0x461   : > { %3805 = vmatprep.subr.bf16.mxu0 %v4533_v55 }
 0x464   : > { %3807 = vmatpush3.bf16.msra.mxu0 %v4533_v55 }
 0x465   : > { %3809 = vmatprep.subr.bf16.mxu0 %v4583_v59 }
 0x467   : > { %3356 = vmatmul.mubr.msk.f32.vlgmr.msra.gmra.mrb[0].mxu0 %vm322_vm2, %v4560_v7 }
 0x468   : > { %3811 = vmatpush3.bf16.msra.mxu0 %v4583_v59  ;;  %3374 = vmatprep.mubr.f32.mxu0 %v493_v15 }
 0x469   : > { %3813 = vmatprep.subr.bf16.mxu0 %v4537_v56 }
 0x46c   : > { %3815 = vmatpush3.bf16.msra.mxu0 %v4537_v56 }
 0x46d   : > { %3817 = vmatprep.subr.bf16.mxu0 %v4541_v58 }
 0x470   : > { %3819 = vmatpush3.bf16.msra.mxu0 %v4541_v58 }
 0x471   : > { %3821 = vmatprep.subr.bf16.mxu0 %v4545_v60 }
 0x474   : > { %3823 = vmatpush3.bf16.msra.mxu0 %v4545_v60 }
 0x475   : > { %3825 = vmatprep.subr.bf16.mxu0 %v4441_v14 }
 0x477   : > { %3375 = vmatmul.mubr.f32.vlgmr.msra.gmra.mrb[0].mxu0 %v503_v57 }
 0x478   : > { %3827 = vmatpush3.bf16.msra.mxu0 %v4441_v14  ;;  %3393 = vmatprep.mubr.f32.mxu0 %v494_v22 }
 0x479   : > { %3829 = vmatprep.subr.bf16.mxu0 %v4443_v18 }
 0x47c   : > { %3831 = vmatpush3.bf16.msra.mxu0 %v4443_v18 }
 0x47d   : > { %3833 = vmatprep.subr.bf16.mxu0 %v4464_v30 }
 0x480   : > { %3835 = vmatpush3.bf16.msra.mxu0 %v4464_v30 }
 0x481   : > { %3837 = vmatprep.subr.bf16.mxu0 %v4470_v32 }
 0x484   : > { %3839 = vmatpush3.bf16.msra.mxu0 %v4470_v32 }
 0x485   : > { %3841 = vmatprep.subr.bf16.mxu0 %v4547_v61 }
 0x487   : > { %3394 = vmatmul.mubr.f32.vlgmr.msra.gmra.mrb[0].mxu0 %v504_v16 }
 0x488   : > { %3843 = vmatpush3.bf16.msra.mxu0 %v4547_v61  ;;  %3412 = vmatprep.mubr.msk.f32.mxu0 %vm322_vm2, %v3040_v11 }
 0x489   : > { %3845 = vmatprep.subr.bf16.mxu0 %v4549_v62 }
 0x48c   : > { %3847 = vmatpush3.bf16.msra.mxu0 %v4549_v62 }
 0x48d   : > { %3849 = vmatprep.subr.bf16.mxu0 %v4551_v63 }
 0x490   : > { %3851 = vmatpush3.bf16.msra.mxu0 %v4551_v63 }
 0x491   : > { %3853 = vmatprep.subr.bf16.mxu0 %v4553_v0 }
 0x494   : > { %3855 = vmatpush3.bf16.msra.mxu0 %v4553_v0 }
 0x495   : > { %3857 = vmatprep.subr.bf16.mxu0 %v4441_v14 }
 0x497   : > { %3413 = vmatmul.mubr.msk.f32.vlgmr.msra.gmra.mrb[0].mxu0 %vm322_vm2, %v4560_v7 }
 0x498   : > { %3859 = vmatpush3.bf16.msra.mxu0 %v4441_v14  ;;  %3431 = vmatprep.mubr.msk.f32.mxu0 %vm322_vm2, %v3040_v11 }
 0x499   : > { %3861 = vmatprep.subr.bf16.mxu0 %v4443_v18 }
 0x49c   : > { %3863 = vmatpush3.bf16.msra.mxu0 %v4443_v18 }
 0x49d   : > { %3865 = vmatprep.subr.bf16.mxu0 %v4464_v30 }
 0x4a0   : > { %3867 = vmatpush3.bf16.msra.mxu0 %v4464_v30 }
 0x4a1   : > { %3869 = vmatprep.subr.bf16.mxu0 %v4470_v32 }
 0x4a4   : > { %3871 = vmatpush3.bf16.msra.mxu0 %v4470_v32 }
 0x4a5   : > { %3969 = vmatprep.subr.bf16.mxu0 %v4441_v14 }
 0x4a7   : > { %3432 = vmatmul.mubr.msk.f32.vlgmr.msra.gmra.mrb[0].mxu0 %vm322_vm2, %v4560_v7 }
 0x4a8   : > { %3971 = vmatpush3.bf16.msra.mxu0 %v4441_v14 }
 0x4a9   : > { %3973 = vmatprep.subr.bf16.mxu0 %v4443_v18 }
 0x4ac   : > { %3975 = vmatpush3.bf16.msra.mxu0 %v4443_v18 }
 0x4ad   : > { %3977 = vmatprep.subr.bf16.mxu0 %v4464_v30 }
 0x4b0   : > { %3979 = vmatpush3.bf16.msra.mxu0 %v4464_v30 }
 0x4b1   : > { %3981 = vmatprep.subr.bf16.mxu0 %v4470_v32 }
 0x4b4   : > { %3983 = vmatpush3.bf16.msra.mxu0 %v4470_v32 }
 0x4b5   : > { %3985 = vmatprep.subr.bf16.mxu0 %v4517_v38 }
 0x4d9   : > { %v1006_v19 = vpop.xlane.xlu0 %1005 }
 0x4da   : > { %vm1008_vm15 = vcmp.eq.f32.partialorder %v4557_v28, %v1006_v19 }
 0x4db   : > { %v1010_v20 = vsel %vm1008_vm15, %v4487_v17, 64  ;;  %v1003_v34 = vpop.xlane.xlu1 %1002 }
 0x4dc   : > { %v1026_v35 = vsel %vm322_vm2, %v1010_v20, 2147483647  ;;  %vm1007_vm0 = vcmp.eq.f32.partialorder %v4568_v10, %v1003_v34 }
 0x4dd   : > { %v1009_v36 = vsel %vm1007_vm0, %v4487_v17, 64  ;;  %v1028_v37 = vshra.s32 %v1026_v35, 16  ;;  %v1027_v43 = vand.u32 65535, %v1026_v35 }
 0x4de   : > { %v1011_v39 = vsel %vm322_vm2, %v1009_v36, 2147483647 }
 0x4df   : > { %v1030_v40 = vcvt.s32.f32 %v1028_v37  ;;  %v1013_v41 = vshra.s32 %v1011_v39, 16  ;;  %v1012_v44 = vand.u32 65535, %v1011_v39  ;;  %v1029_v47 = vcvt.s32.f32 %v1027_v43 }
 0x4e1   : > { %1031 = vmin.xlane.f32.xlu0 %v1030_v40  ;;  %v1015_v42 = vcvt.s32.f32 %v1013_v41  ;;  %v1014_v51 = vcvt.s32.f32 %v1012_v44 }
 0x4e3   : > { %1016 = vmin.xlane.f32.xlu1 %v1015_v42 }
 0x56e   : > { %v1032_v46 = vpop.xlane.xlu0 %1031 }
 0x56f   : > { %vm1033_vm1 = vcmp.eq.f32.partialorder %v1030_v40, %v1032_v46  ;;  %v1038_v1 = vcvt.f32.s32 %v1032_v46 }
 0x570   : > { %v1034_v48 = vsel %vm1033_vm1, %v1029_v47, inf  ;;  %v1017_v49 = vpop.xlane.xlu1 %1016 }
 0x571   : > { %1035 = vmin.xlane.f32.xlu0 %v1034_v48  ;;  %vm1018_vm3 = vcmp.eq.f32.partialorder %v1015_v42, %v1017_v49  ;;  %v1023_v2 = vcvt.f32.s32 %v1017_v49  ;;  %v1039_v24 = vshll.u32 %v1038_v1, 16 }
 0x572   : > { %v1019_v52 = vsel %vm1018_vm3, %v1014_v51, inf  ;;  %vm2907_vm3 = vcmask 261120  }
 0x573   : > { %1020 = vmin.xlane.f32.xlu1 %v1019_v52  ;;  %v1024_v25 = vshll.u32 %v1023_v2, 16 }
 0x57a   : > { %v4641_v53 = vpop.f32.mrb[0].mxu0 }
 0x57b   : > { %v4643_v54 = vpop.f32.mrb[1].mxu0 }
 0x5fe   : > { %v1036_v21 = vpop.xlane.xlu0 %1035 }
 0x5ff   : > { %v1037_v3 = vcvt.f32.s32 %v1036_v21 }
 0x600   : > { %v1021_v4 = vpop.xlane.xlu1 %1020 }
 0x601   : > { %v1040_v27 = vadd.s32 %v1039_v24, %v1037_v3  ;;  %v1022_v5 = vcvt.f32.s32 %v1021_v4 }
 0x603   : > { %v1025_v6 = vadd.s32 %v1024_v25, %v1022_v5  ;;  %vm1042_vm4 = vcmp.eq.s32.totalorder %v4487_v17, %v1040_v27 }
 0x604   : > { %v4647_v7 = vsel %vm1042_vm4, inf, %v4557_v28  ;;  %v4650_v8 = vsel %vm1042_vm4, 1.0, %v4350_v29 }
 0x605   : > { %v1640_v9 = vsel %vm322_vm2, %v4647_v7, inf  ;;  %v1051_v11 = vsel %vm322_vm2, %v4650_v8, 0  ;;  %vm1041_vm5 = vcmp.eq.s32.totalorder %v4487_v17, %v1025_v6 }
 0x606   : > { %1641 = vmin.xlane.f32.xlu0 %v1640_v9  ;;  %v4658_v57 = vsel %vm1041_vm5, inf, %v4568_v10  ;;  %v3048_v12 = vsel %vm1041_vm5, 1.0, %v4350_v29  ;;  %v1137_v13 = vsub.f32 %v1051_v11, %v1051_v11 }
 0x607   : > { %v1637_v28 = vsel %vm322_vm2, %v4658_v57, inf  ;;  %v1048_v15 = vsel %vm322_vm2, %v3048_v12, 0 }
 0x608   : > { %1638 = vmin.xlane.f32.xlu1 %v1637_v28  ;;  %v1127_v16 = vsub.f32 %v1048_v15, %v1048_v15  ;;  %v1138_v22 = vand.u32 4294901760, %v1137_v13 }
 0x60a   : > { %v1128_v23 = vand.u32 4294901760, %v1127_v16  ;;  %v1139_v26 = vsub.f32 %v1137_v13, %v1138_v22 }
 0x60c   : > { %v1129_v31 = vsub.f32 %v1127_v16, %v1128_v23  ;;  %v1140_v19 = vand.u32 4294901760, %v1139_v26 }
 0x60e   : > { %v1130_v33 = vand.u32 4294901760, %v1129_v31 }
 0x610   : > { %3450 = vmatprep.mubr.f32.mxu1 %v1130_v33 }
 0x611   : > { %3451 = vmatmul.mubr.f32.vlgmr.msra.gmra.mrb[0].mxu1 %v1140_v19 }
 0x612   : > { %3891 = vmatpush3.bf16.msra.mxu1 %v4517_v38  ;;  %3469 = vmatprep.mubr.msk.f32.mxu1 %vm322_vm2, %v3048_v12 }
 0x613   : > { %3893 = vmatprep.subr.bf16.mxu1 %v4525_v45 }
 0x616   : > { %3895 = vmatpush3.bf16.msra.mxu1 %v4525_v45 }
 0x617   : > { %3897 = vmatprep.subr.bf16.mxu1 %v4529_v50 }
 0x61a   : > { %3899 = vmatpush3.bf16.msra.mxu1 %v4529_v50 }
 0x61b   : > { %3901 = vmatprep.subr.bf16.mxu1 %v4533_v55 }
 0x61e   : > { %3903 = vmatpush3.bf16.msra.mxu1 %v4533_v55 }
 0x61f   : > { %3905 = vmatprep.subr.bf16.mxu1 %v4583_v59 }
 0x621   : > { %3470 = vmatmul.mubr.msk.f32.vlgmr.msra.gmra.mrb[0].mxu1 %vm322_vm2, %v4650_v8 }
 0x622   : > { %3907 = vmatpush3.bf16.msra.mxu1 %v4583_v59  ;;  %3488 = vmatprep.mubr.f32.mxu1 %v1127_v16 }
 0x623   : > { %3909 = vmatprep.subr.bf16.mxu1 %v4537_v56 }
 0x626   : > { %3911 = vmatpush3.bf16.msra.mxu1 %v4537_v56 }
 0x627   : > { %3913 = vmatprep.subr.bf16.mxu1 %v4541_v58 }
 0x62a   : > { %3915 = vmatpush3.bf16.msra.mxu1 %v4541_v58 }
 0x62b   : > { %3917 = vmatprep.subr.bf16.mxu1 %v4545_v60 }
 0x62e   : > { %3919 = vmatpush3.bf16.msra.mxu1 %v4545_v60 }
 0x62f   : > { %3921 = vmatprep.subr.bf16.mxu1 %v4441_v14 }
 0x631   : > { %3489 = vmatmul.mubr.f32.vlgmr.msra.gmra.mrb[0].mxu1 %v1137_v13 }
 0x632   : > { %3923 = vmatpush3.bf16.msra.mxu1 %v4441_v14  ;;  %3507 = vmatprep.mubr.f32.mxu1 %v1128_v23 }
 0x633   : > { %3925 = vmatprep.subr.bf16.mxu1 %v4443_v18 }
 0x636   : > { %3927 = vmatpush3.bf16.msra.mxu1 %v4443_v18 }
 0x637   : > { %3929 = vmatprep.subr.bf16.mxu1 %v4464_v30 }
 0x63a   : > { %3931 = vmatpush3.bf16.msra.mxu1 %v4464_v30 }
 0x63b   : > { %3933 = vmatprep.subr.bf16.mxu1 %v4470_v32 }
 0x63e   : > { %3935 = vmatpush3.bf16.msra.mxu1 %v4470_v32 }
 0x63f   : > { %3937 = vmatprep.subr.bf16.mxu1 %v4547_v61 }
 0x641   : > { %3508 = vmatmul.mubr.f32.vlgmr.msra.gmra.mrb[0].mxu1 %v1138_v22 }
 0x642   : > { %3939 = vmatpush3.bf16.msra.mxu1 %v4547_v61  ;;  %3526 = vmatprep.mubr.msk.f32.mxu1 %vm322_vm2, %v3048_v12 }
 0x643   : > { %3941 = vmatprep.subr.bf16.mxu1 %v4549_v62 }
 0x646   : > { %3943 = vmatpush3.bf16.msra.mxu1 %v4549_v62 }
 0x647   : > { %3945 = vmatprep.subr.bf16.mxu1 %v4551_v63 }
 0x64a   : > { %3947 = vmatpush3.bf16.msra.mxu1 %v4551_v63 }
 0x64b   : > { %3949 = vmatprep.subr.bf16.mxu1 %v4553_v0 }
 0x64e   : > { %3951 = vmatpush3.bf16.msra.mxu1 %v4553_v0 }
 0x64f   : > { %3953 = vmatprep.subr.bf16.mxu1 %v4441_v14 }
 0x651   : > { %3527 = vmatmul.mubr.msk.f32.vlgmr.msra.gmra.mrb[0].mxu1 %vm322_vm2, %v4650_v8 }
 0x652   : > { %3955 = vmatpush3.bf16.msra.mxu1 %v4441_v14  ;;  %3545 = vmatprep.mubr.msk.f32.mxu1 %vm322_vm2, %v3048_v12 }
 0x653   : > { %3957 = vmatprep.subr.bf16.mxu1 %v4443_v18 }
 0x656   : > { %3959 = vmatpush3.bf16.msra.mxu1 %v4443_v18 }
 0x657   : > { %3961 = vmatprep.subr.bf16.mxu1 %v4464_v30 }
 0x65a   : > { %3963 = vmatpush3.bf16.msra.mxu1 %v4464_v30 }
 0x65b   : > { %3965 = vmatprep.subr.bf16.mxu1 %v4470_v32 }
 0x65e   : > { %3967 = vmatpush3.bf16.msra.mxu1 %v4470_v32 }
 0x65f   : > { %4065 = vmatprep.subr.bf16.mxu1 %v4441_v14 }
 0x661   : > { %3546 = vmatmul.mubr.msk.f32.vlgmr.msra.gmra.mrb[0].mxu1 %vm322_vm2, %v4650_v8 }
 0x662   : > { %4067 = vmatpush3.bf16.msra.mxu1 %v4441_v14 }
 0x663   : > { %4069 = vmatprep.subr.bf16.mxu1 %v4443_v18 }
 0x666   : > { %4071 = vmatpush3.bf16.msra.mxu1 %v4443_v18 }
 0x667   : > { %4073 = vmatprep.subr.bf16.mxu1 %v4464_v30 }
 0x66a   : > { %4075 = vmatpush3.bf16.msra.mxu1 %v4464_v30 }
 0x66b   : > { %4077 = vmatprep.subr.bf16.mxu1 %v4470_v32 }
 0x66e   : > { %4079 = vmatpush3.bf16.msra.mxu1 %v4470_v32 }
 0x66f   : > { %4081 = vmatprep.subr.bf16.mxu1 %v4517_v38 }
 0x693   : > { %v1642_v10 = vpop.xlane.xlu0 %1641 }
 0x694   : > { %vm1644_vm6 = vcmp.eq.f32.partialorder %v4647_v7, %v1642_v10 }
 0x695   : > { %v1646_v20 = vsel %vm1644_vm6, %v4487_v17, 64  ;;  %v1639_v34 = vpop.xlane.xlu1 %1638 }
 0x696   : > { %v1662_v35 = vsel %vm322_vm2, %v1646_v20, 2147483647  ;;  %vm1643_vm7 = vcmp.eq.f32.partialorder %v4658_v57, %v1639_v34 }
 0x697   : > { %v1645_v36 = vsel %vm1643_vm7, %v4487_v17, 64  ;;  %v1664_v37 = vshra.s32 %v1662_v35, 16  ;;  %v1663_v43 = vand.u32 65535, %v1662_v35 }
 0x698   : > { %v1647_v39 = vsel %vm322_vm2, %v1645_v36, 2147483647 }
 0x699   : > { %v1666_v40 = vcvt.s32.f32 %v1664_v37  ;;  %v1649_v41 = vshra.s32 %v1647_v39, 16  ;;  %v1648_v44 = vand.u32 65535, %v1647_v39  ;;  %v1665_v47 = vcvt.s32.f32 %v1663_v43 }
 0x69b   : > { %1667 = vmin.xlane.f32.xlu0 %v1666_v40  ;;  %v1651_v42 = vcvt.s32.f32 %v1649_v41  ;;  %v1650_v51 = vcvt.s32.f32 %v1648_v44 }
 0x69d   : > { %1652 = vmin.xlane.f32.xlu1 %v1651_v42 }
 0x728   : > { %v1668_v46 = vpop.xlane.xlu0 %1667 }
 0x729   : > { %vm1669_vm8 = vcmp.eq.f32.partialorder %v1666_v40, %v1668_v46  ;;  %v1674_v3 = vcvt.f32.s32 %v1668_v46 }
 0x72a   : > { %v1670_v48 = vsel %vm1669_vm8, %v1665_v47, inf  ;;  %v1653_v49 = vpop.xlane.xlu1 %1652 }
 0x72b   : > { %1671 = vmin.xlane.f32.xlu0 %v1670_v48  ;;  %vm1654_vm9 = vcmp.eq.f32.partialorder %v1651_v42, %v1653_v49  ;;  %v1659_v4 = vcvt.f32.s32 %v1653_v49  ;;  %v1675_v27 = vshll.u32 %v1674_v3, 16 }
 0x72c   : > { %v1655_v52 = vsel %vm1654_vm9, %v1650_v51, inf }
 0x72d   : > { %1656 = vmin.xlane.f32.xlu1 %v1655_v52  ;;  %v1660_v8 = vshll.u32 %v1659_v4, 16 }
 0x734   : > { %v4727_v1 = vpop.f32.mrb[0].mxu1 }
 0x735   : > { %v1634_v2 = vmax.f32 %v4641_v53, %v4727_v1  ;;  %v4731_v21 = vpop.f32.mrb[1].mxu1 }
 0x736   : > { %v1633_v24 = vmax.f32 %v4643_v54, %v4731_v21 }
 0x7b8   : > { %v1672_v25 = vpop.xlane.xlu0 %1671 }
 0x7b9   : > { %v1673_v5 = vcvt.f32.s32 %v1672_v25 }
 0x7ba   : > { %v1657_v6 = vpop.xlane.xlu1 %1656 }
 0x7bb   : > { %v1676_v9 = vadd.s32 %v1675_v27, %v1673_v5  ;;  %v1658_v11 = vcvt.f32.s32 %v1657_v6 }
 0x7bd   : > { %v1661_v12 = vadd.s32 %v1660_v8, %v1658_v11  ;;  %vm1678_vm10 = vcmp.eq.s32.totalorder %v4487_v17, %v1676_v9 }
 0x7be   : > { %v4737_v13 = vsel %vm1678_vm10, inf, %v4647_v7  ;;  %v4740_v28 = vsel %vm1678_vm10, 1.0, %v4350_v29 }
 0x7bf   : > { %v2276_v15 = vsel %vm322_vm2, %v4737_v13, inf  ;;  %v1687_v16 = vsel %vm322_vm2, %v4740_v28, 0  ;;  %vm1677_vm11 = vcmp.eq.s32.totalorder %v4487_v17, %v1661_v12 }
 0x7c0   : > { %2277 = vmin.xlane.f32.xlu0 %v2276_v15  ;;  %v1773_v22 = vsub.f32 %v1687_v16, %v1687_v16  ;;  %v4748_v23 = vsel %vm1677_vm11, inf, %v4658_v57  ;;  %v3056_v26 = vsel %vm1677_vm11, 1.0, %v4350_v29 }
 0x7c1   : > { %v2273_v7 = vsel %vm322_vm2, %v4748_v23, inf  ;;  %v1684_v31 = vsel %vm322_vm2, %v3056_v26, 0 }
 0x7c2   : > { %2274 = vmin.xlane.f32.xlu1 %v2273_v7  ;;  %v1763_v33 = vsub.f32 %v1684_v31, %v1684_v31  ;;  %v1774_v19 = vand.u32 4294901760, %v1773_v22 }
 0x7c4   : > { %v1764_v10 = vand.u32 4294901760, %v1763_v33  ;;  %v1775_v20 = vsub.f32 %v1773_v22, %v1774_v19 }
 0x7c6   : > { %v1765_v34 = vsub.f32 %v1763_v33, %v1764_v10  ;;  %v1776_v36 = vand.u32 4294901760, %v1775_v20 }
 0x7c8   : > { %v1766_v35 = vand.u32 4294901760, %v1765_v34 }
 0x7ca   : > { %3564 = vmatprep.mubr.f32.mxu0 %v1766_v35 }
 0x7cb   : > { %3565 = vmatmul.mubr.f32.vlgmr.msra.gmra.mrb[2].mxu0 %v1776_v36 }
 0x7cc   : > { %3987 = vmatpush3.bf16.msra.mxu0 %v4517_v38  ;;  %3583 = vmatprep.mubr.msk.f32.mxu0 %vm322_vm2, %v3056_v26 }
 0x7cd   : > { %3989 = vmatprep.subr.bf16.mxu0 %v4525_v45 }
 0x7d0   : > { %3991 = vmatpush3.bf16.msra.mxu0 %v4525_v45 }
 0x7d1   : > { %3993 = vmatprep.subr.bf16.mxu0 %v4529_v50 }
 0x7d4   : > { %3995 = vmatpush3.bf16.msra.mxu0 %v4529_v50 }
 0x7d5   : > { %3997 = vmatprep.subr.bf16.mxu0 %v4533_v55 }
 0x7d8   : > { %3999 = vmatpush3.bf16.msra.mxu0 %v4533_v55 }
 0x7d9   : > { %4001 = vmatprep.subr.bf16.mxu0 %v4583_v59 }
 0x7db   : > { %3584 = vmatmul.mubr.msk.f32.vlgmr.msra.gmra.mrb[2].mxu0 %vm322_vm2, %v4740_v28 }
 0x7dc   : > { %4003 = vmatpush3.bf16.msra.mxu0 %v4583_v59  ;;  %3602 = vmatprep.mubr.f32.mxu0 %v1763_v33 }
 0x7dd   : > { %4005 = vmatprep.subr.bf16.mxu0 %v4537_v56 }
 0x7e0   : > { %4007 = vmatpush3.bf16.msra.mxu0 %v4537_v56 }
 0x7e1   : > { %4009 = vmatprep.subr.bf16.mxu0 %v4541_v58 }
 0x7e4   : > { %4011 = vmatpush3.bf16.msra.mxu0 %v4541_v58 }
 0x7e5   : > { %4013 = vmatprep.subr.bf16.mxu0 %v4545_v60 }
 0x7e8   : > { %4015 = vmatpush3.bf16.msra.mxu0 %v4545_v60 }
 0x7e9   : > { %4017 = vmatprep.subr.bf16.mxu0 %v4441_v14 }
 0x7eb   : > { %3603 = vmatmul.mubr.f32.vlgmr.msra.gmra.mrb[2].mxu0 %v1773_v22 }
 0x7ec   : > { %4019 = vmatpush3.bf16.msra.mxu0 %v4441_v14  ;;  %3621 = vmatprep.mubr.f32.mxu0 %v1764_v10 }
 0x7ed   : > { %4021 = vmatprep.subr.bf16.mxu0 %v4443_v18 }
 0x7f0   : > { %4023 = vmatpush3.bf16.msra.mxu0 %v4443_v18 }
 0x7f1   : > { %4025 = vmatprep.subr.bf16.mxu0 %v4464_v30 }
 0x7f4   : > { %4027 = vmatpush3.bf16.msra.mxu0 %v4464_v30 }
 0x7f5   : > { %4029 = vmatprep.subr.bf16.mxu0 %v4470_v32 }
 0x7f8   : > { %4031 = vmatpush3.bf16.msra.mxu0 %v4470_v32 }
 0x7f9   : > { %4033 = vmatprep.subr.bf16.mxu0 %v4547_v61 }
 0x7fb   : > { %3622 = vmatmul.mubr.f32.vlgmr.msra.gmra.mrb[2].mxu0 %v1774_v19 }
 0x7fc   : > { %4035 = vmatpush3.bf16.msra.mxu0 %v4547_v61  ;;  %3640 = vmatprep.mubr.msk.f32.mxu0 %vm322_vm2, %v3056_v26 }
 0x7fd   : > { %4037 = vmatprep.subr.bf16.mxu0 %v4549_v62 }
 0x800   : > { %4039 = vmatpush3.bf16.msra.mxu0 %v4549_v62 }
 0x801   : > { %4041 = vmatprep.subr.bf16.mxu0 %v4551_v63 }
 0x804   : > { %4043 = vmatpush3.bf16.msra.mxu0 %v4551_v63 }
 0x805   : > { %4045 = vmatprep.subr.bf16.mxu0 %v4553_v0 }
 0x808   : > { %4047 = vmatpush3.bf16.msra.mxu0 %v4553_v0 }
 0x809   : > { %4049 = vmatprep.subr.bf16.mxu0 %v4441_v14 }
 0x80b   : > { %3641 = vmatmul.mubr.msk.f32.vlgmr.msra.gmra.mrb[2].mxu0 %vm322_vm2, %v4740_v28 }
 0x80c   : > { %4051 = vmatpush3.bf16.msra.mxu0 %v4441_v14  ;;  %3659 = vmatprep.mubr.msk.f32.mxu0 %vm322_vm2, %v3056_v26 }
 0x80d   : > { %4053 = vmatprep.subr.bf16.mxu0 %v4443_v18 }
 0x810   : > { %4055 = vmatpush3.bf16.msra.mxu0 %v4443_v18 }
 0x811   : > { %4057 = vmatprep.subr.bf16.mxu0 %v4464_v30 }
 0x814   : > { %4059 = vmatpush3.bf16.msra.mxu0 %v4464_v30 }
 0x815   : > { %4061 = vmatprep.subr.bf16.mxu0 %v4470_v32 }
 0x818   : > { %4063 = vmatpush3.bf16.msra.mxu0 %v4470_v32 }
 0x81b   : > { %3660 = vmatmul.mubr.msk.f32.vlgmr.msra.gmra.mrb[2].mxu0 %vm322_vm2, %v4740_v28 }
 0x84d   : > { %v2278_v57 = vpop.xlane.xlu0 %2277 }
 0x84e   : > { %vm2280_vm12 = vcmp.eq.f32.partialorder %v4737_v13, %v2278_v57 }
 0x84f   : > { %v2282_v37 = vsel %vm2280_vm12, %v4487_v17, 64  ;;  %v2275_v39 = vpop.xlane.xlu1 %2274 }
 0x850   : > { %v2298_v40 = vsel %vm322_vm2, %v2282_v37, 2147483647  ;;  %vm2279_vm13 = vcmp.eq.f32.partialorder %v4748_v23, %v2275_v39 }
 0x851   : > { %v2281_v41 = vsel %vm2279_vm13, %v4487_v17, 64  ;;  %v2300_v42 = vshra.s32 %v2298_v40, 16  ;;  %v2299_v48 = vand.u32 65535, %v2298_v40 }
 0x852   : > { %v2283_v43 = vsel %vm322_vm2, %v2281_v41, 2147483647 }
 0x853   : > { %v2302_v44 = vcvt.s32.f32 %v2300_v42  ;;  %v2285_v46 = vshra.s32 %v2283_v43, 16  ;;  %v2284_v49 = vand.u32 65535, %v2283_v43  ;;  %v2301_v52 = vcvt.s32.f32 %v2299_v48 }
 0x855   : > { %2303 = vmin.xlane.f32.xlu0 %v2302_v44  ;;  %v2287_v47 = vcvt.s32.f32 %v2285_v46  ;;  %v2286_v25 = vcvt.s32.f32 %v2284_v49 }
 0x857   : > { %2288 = vmin.xlane.f32.xlu1 %v2287_v47 }
 0x8e2   : > { %v2304_v51 = vpop.xlane.xlu0 %2303 }
 0x8e3   : > { %vm2305_vm14 = vcmp.eq.f32.partialorder %v2302_v44, %v2304_v51  ;;  %v2310_v11 = vcvt.f32.s32 %v2304_v51 }
 0x8e4   : > { %v2306_v3 = vsel %vm2305_vm14, %v2301_v52, inf  ;;  %v2289_v4 = vpop.xlane.xlu1 %2288 }
 0x8e5   : > { %2307 = vmin.xlane.f32.xlu0 %v2306_v3  ;;  %vm2290_vm15 = vcmp.eq.f32.partialorder %v2287_v47, %v2289_v4  ;;  %v2295_v12 = vcvt.f32.s32 %v2289_v4  ;;  %v2311_v28 = vshll.u32 %v2310_v11, 16 }
 0x8e6   : > { %v2291_v27 = vsel %vm2290_vm15, %v2286_v25, inf }
 0x8e7   : > { %2292 = vmin.xlane.f32.xlu1 %v2291_v27  ;;  %v2296_v22 = vshll.u32 %v2295_v12, 16 }
 0x8ee   : > { %v3661_v5 = vpop.f32.mrb[2].mxu0 }
 0x8ef   : > { %v4811_v6 = vmax.f32 %v1634_v2, %v3661_v5  ;;  %v2259_v8 = vpop.f32.mrb[3].mxu0 }
 0x8f0   : > { %v4816_v9 = vmax.f32 %v1633_v24, %v2259_v8 }
 0x972   : > { %v2308_v13 = vpop.xlane.xlu0 %2307 }
 0x973   : > { %v2309_v15 = vcvt.f32.s32 %v2308_v13 }
 0x974   : > { %v2293_v16 = vpop.xlane.xlu1 %2292 }
 0x975   : > { %v2312_v23 = vadd.s32 %v2311_v28, %v2309_v15  ;;  %v2294_v26 = vcvt.f32.s32 %v2293_v16 }
 0x977   : > { %vm2314_vm0 = vcmp.eq.s32.totalorder %v4487_v17, %v2312_v23  ;;  %v2297_v53 = vadd.s32 %v2296_v22, %v2294_v26 }
 0x978   : > { %v4820_v1 = vsel %vm2314_vm0, 1.0, %v4350_v29 }
 0x979   : > { %v2323_v54 = vsel %vm322_vm2, %v4820_v1, 0  ;;  %vm2313_vm1 = vcmp.eq.s32.totalorder %v4487_v17, %v2297_v53 }
 0x97a   : > { %v2409_v2 = vsub.f32 %v2323_v54, %v2323_v54  ;;  %v3064_v21 = vsel %vm2313_vm1, 1.0, %v4350_v29 }
 0x97b   : > { %v2320_v24 = vsel %vm322_vm2, %v3064_v21, 0 }
 0x97c   : > { %v2399_v7 = vsub.f32 %v2320_v24, %v2320_v24  ;;  %v2410_v31 = vand.u32 4294901760, %v2409_v2 }
 0x97e   : > { %v2400_v33 = vand.u32 4294901760, %v2399_v7  ;;  %v2411_v19 = vsub.f32 %v2409_v2, %v2410_v31 }
 0x980   : > { %v2401_v10 = vsub.f32 %v2399_v7, %v2400_v33  ;;  %v2412_v34 = vand.u32 4294901760, %v2411_v19 }
 0x982   : > { %v2402_v20 = vand.u32 4294901760, %v2401_v10 }
 0x984   : > { %3678 = vmatprep.mubr.f32.mxu1 %v2402_v20 }
 0x985   : > { %3679 = vmatmul.mubr.f32.vlgmr.msra.gmra.mrb[2].mxu1 %v2412_v34 }
 0x986   : > { %4083 = vmatpush3.bf16.msra.mxu1 %v4517_v38  ;;  %3697 = vmatprep.mubr.msk.f32.mxu1 %vm322_vm2, %v3064_v21 }
 0x987   : > { %4085 = vmatprep.subr.bf16.mxu1 %v4525_v45 }
 0x98a   : > { %4087 = vmatpush3.bf16.msra.mxu1 %v4525_v45 }
 0x98b   : > { %4089 = vmatprep.subr.bf16.mxu1 %v4529_v50 }
 0x98e   : > { %4091 = vmatpush3.bf16.msra.mxu1 %v4529_v50 }
 0x98f   : > { %4093 = vmatprep.subr.bf16.mxu1 %v4533_v55 }
 0x992   : > { %4095 = vmatpush3.bf16.msra.mxu1 %v4533_v55 }
 0x993   : > { %4097 = vmatprep.subr.bf16.mxu1 %v4583_v59 }
 0x995   : > { %3698 = vmatmul.mubr.msk.f32.vlgmr.msra.gmra.mrb[2].mxu1 %vm322_vm2, %v4820_v1 }
 0x996   : > { %4099 = vmatpush3.bf16.msra.mxu1 %v4583_v59  ;;  %3716 = vmatprep.mubr.f32.mxu1 %v2399_v7 }
 0x997   : > { %4101 = vmatprep.subr.bf16.mxu1 %v4537_v56 }
 0x99a   : > { %4103 = vmatpush3.bf16.msra.mxu1 %v4537_v56 }
 0x99b   : > { %4105 = vmatprep.subr.bf16.mxu1 %v4541_v58 }
 0x99e   : > { %4107 = vmatpush3.bf16.msra.mxu1 %v4541_v58 }
 0x99f   : > { %4109 = vmatprep.subr.bf16.mxu1 %v4545_v60 }
 0x9a2   : > { %4111 = vmatpush3.bf16.msra.mxu1 %v4545_v60 }
 0x9a3   : > { %4113 = vmatprep.subr.bf16.mxu1 %v4441_v14 }
 0x9a5   : > { %3717 = vmatmul.mubr.f32.vlgmr.msra.gmra.mrb[2].mxu1 %v2409_v2 }
 0x9a6   : > { %4115 = vmatpush3.bf16.msra.mxu1 %v4441_v14  ;;  %3735 = vmatprep.mubr.f32.mxu1 %v2400_v33 }
 0x9a7   : > { %4117 = vmatprep.subr.bf16.mxu1 %v4443_v18 }
 0x9aa   : > { %4119 = vmatpush3.bf16.msra.mxu1 %v4443_v18 }
 0x9ab   : > { %4121 = vmatprep.subr.bf16.mxu1 %v4464_v30 }
 0x9ae   : > { %4123 = vmatpush3.bf16.msra.mxu1 %v4464_v30 }
 0x9af   : > { %4125 = vmatprep.subr.bf16.mxu1 %v4470_v32 }
 0x9b2   : > { %4127 = vmatpush3.bf16.msra.mxu1 %v4470_v32 }
 0x9b3   : > { %4129 = vmatprep.subr.bf16.mxu1 %v4547_v61 }
 0x9b5   : > { %3736 = vmatmul.mubr.f32.vlgmr.msra.gmra.mrb[2].mxu1 %v2410_v31 }
 0x9b6   : > { %4131 = vmatpush3.bf16.msra.mxu1 %v4547_v61  ;;  %3754 = vmatprep.mubr.msk.f32.mxu1 %vm322_vm2, %v3064_v21 }
 0x9b7   : > { %4133 = vmatprep.subr.bf16.mxu1 %v4549_v62 }
 0x9ba   : > { %4135 = vmatpush3.bf16.msra.mxu1 %v4549_v62 }
 0x9bb   : > { %4137 = vmatprep.subr.bf16.mxu1 %v4551_v63 }
 0x9be   : > { %4139 = vmatpush3.bf16.msra.mxu1 %v4551_v63 }
 0x9bf   : > { %4141 = vmatprep.subr.bf16.mxu1 %v4553_v0 }
 0x9c2   : > { %4143 = vmatpush3.bf16.msra.mxu1 %v4553_v0 }
 0x9c3   : > { %4145 = vmatprep.subr.bf16.mxu1 %v4441_v14 }
 0x9c5   : > { %3755 = vmatmul.mubr.msk.f32.vlgmr.msra.gmra.mrb[2].mxu1 %vm322_vm2, %v4820_v1 }
 0x9c6   : > { %4147 = vmatpush3.bf16.msra.mxu1 %v4441_v14  ;;  %3773 = vmatprep.mubr.msk.f32.mxu1 %vm322_vm2, %v3064_v21 }
 0x9c7   : > { %4149 = vmatprep.subr.bf16.mxu1 %v4443_v18 }
 0x9ca   : > { %4151 = vmatpush3.bf16.msra.mxu1 %v4443_v18 }
 0x9cb   : > { %4153 = vmatprep.subr.bf16.mxu1 %v4464_v30 }
 0x9ce   : > { %4155 = vmatpush3.bf16.msra.mxu1 %v4464_v30 }
 0x9cf   : > { %4157 = vmatprep.subr.bf16.mxu1 %v4470_v32 }
 0x9d2   : > { %4159 = vmatpush3.bf16.msra.mxu1 %v4470_v32 }
 0x9d5   : > { %3774 = vmatmul.mubr.msk.f32.vlgmr.msra.gmra.mrb[2].mxu1 %vm322_vm2, %v4820_v1 }
 0xaa8   : > { %v3775_v14 = vpop.f32.mrb[2].mxu1 }
 0xaa9   : > { %v2906_v18 = vmax.f32 %v4811_v6, %v3775_v14  ;;  %v2895_v30 = vpop.f32.mrb[3].mxu1 }
 0xaaa   : > { %v2905_v32 = vmax.f32 %v4816_v9, %v2895_v30 }
 0xaab   : > { %2909 = vst.msk [vmem:[%s216_s21 + $0x8] sm:$0xff] %vm2907_vm3, %v2906_v18 }
 0xaac   : > { %2908 = vst.msk [vmem:[%s216_s21] sm:$0xff] %vm2907_vm3, %v2905_v32 }
 0xaad   : > { %4280 = shalt.err (!%p4277_p5)
}
 0xaae   : > { %s4281_s7 = scalar_lea.hbm %s4883_s29, 256  ;;  %s4285_s10 = scalar_lea.hbm %s4935_s3, 512 }
 0xaaf   : > { %p4282_p6 = scmp.ne.s32.totalorder %s4883_s29, %s4281_s7  ;;  %p4286_p10 = scmp.lt.u32.totalorder %s4883_s29, %s4935_s3 }
 0xab0   : > { %p4287_p11 = scmp.lt.u32.totalorder %s4285_s10, %s4281_s7  ;;  %p4289_p13 = scmp.lt.u32.totalorder %s4281_s7, %s4883_s29 }
 0xab1   : > { %p4283_p7 = pnand %p4282_p6, %p4414_p4 }
 0xab2   : > { %p4288_p12 = por %p4287_p11, %p4286_p10 }
 0xab3   : > { %p4284_p9 = pneg %p4283_p7 }
 0xab4   : > { %p4290_p0 = por %p4289_p13, %p4288_p12 }
 0xab6   : > { %p4291_p1 = pnand %p4290_p0, %p4284_p9 }
 0xab8   : > { %4294 = shalt.err (!%p4291_p1)
}
 0xab9   : > { %s4352_s19 = smov 128   ;;  %s4353_s21 = smov 8  }
 0xaba   : > { %4200 = dma.vmem_to_hbm [thread:$0]  (%p4414_p4), %s4878_s23, 256, %s4883_s29, %s4886_s15, %s4352_s19, %s4352_s19, %s4353_s21  }
 0xabb PF: > { %p4206_p2 = scmp.ge.s32.totalorder %s4345_s17, 2  ;;  %s2941_s26 = sand.u32 1, %s4325_s12  }
 0xabc   : > { %s2942_s27 = scalar_lea.sflag [#allocation3], %s2941_s26 }
 0xabd   : > { %p4203_p3 = pnand %p4206_p2, %p4421_p8 }
 0xabf   : > { %4320 = dma.done.wait (!%p4203_p3), %s2942_s27, 256  }
 0xac0   : > { %4322 = vsyncadd (!%p4203_p3), %s2942_s27, 4294967040  ;;  %s16_s17 = sadd.s32 1, %s4345_s17   ;;  %s4938_s12 = smov %s4329_s13 }
 0xac1   : > { %p13_p5 = scmp.ge.s32.totalorder %s16_s17, 4   ;;  %s4939_s13 = smov %s4333_s14 }
 0xac2   : > { %s4940_s14 = smov %s4427_s25  ;;  %s4941_s15 = smov %s4341_s16 }
 0xac3   : > { %s4942_s16 = smov %s4944_s20  ;;  %15 = sbr.rel (!%p13_p5) target bundleno = 4 (0x4), region = 73 }
 0xaca   :  { %2947 = vsyncpa [#allocation3], 1 }
 0xacb   :  { %2949 = vsyncpa [#allocation3 + $0x1], 1 }

</bundles_post_ra>
